<compile_context>
chip_gen: v7x
topology: tpu7x:2x2x1
jax: 0.10.0
libtpu: 0.0.40
codegen_flags: <defaults>
</compile_context>

<pallas_src>
import functools

import jax
import jax.numpy as jnp
from jax.experimental import pallas as pl
from jax.experimental.pallas import tpu as pltpu

LEAKY_SLOPE = 0.01  # PyTorch nn.LeakyReLU default negative_slope
LANE = 128          # lane width: feature dims padded to multiples of this
TB_MAX = 512        # max batch-tile rows per grid step (multiple of 8 sublanes)


def _round_up(x, m):
    return ((x + m - 1) // m) * m


def _select_batch_tile(batch):
    """Adaptive batch tile.

    - batch <= 8: a single 8-row tile (minimum sublane tile, no over-padding).
    - otherwise: aim for >= 2 grid steps (v7x megacore) capped at TB_MAX so
      v6e/v7x MXU occupancy and per-step overhead amortization stay good.
    """
    b8 = _round_up(batch, 8)
    if b8 <= 8:
        return 8
    return min(TB_MAX, _round_up(pl.cdiv(b8, 2), 8))


def _actor_mlp_kernel(*refs, n_layers, max_action):
    """Fused MLP kernel.

    refs = (obs_ref, w0_ref, b0_ref, w1_ref, b1_ref, ..., out_ref)
    One (TB, input_dim) batch tile per grid step; all weights/biases are
    VMEM-resident (constant index_map). Matmuls run the native bf16 MXU path
    with f32 accumulation, LeakyReLU on the VPU, final tanh on the EUP.
    """
    obs_ref = refs[0]
    out_ref = refs[-1]
    param_refs = refs[1:-1]

    x = obs_ref[...]  # f32 (TB, input_dim)
    for layer in range(n_layers):
        w = param_refs[2 * layer][...]      # bf16 (in_pad, out_pad) -- no upcast
        b = param_refs[2 * layer + 1][...]  # f32  (1, out_pad)
        # bf16 x bf16 -> f32 on the MXU; bias add / accumulation stay f32.
        x = jnp.dot(x.astype(jnp.bfloat16), w,
                    preferred_element_type=jnp.float32) + b
        if layer < n_layers - 1:
            x = jnp.maximum(x, LEAKY_SLOPE * x)  # LeakyReLU (mul + max)
    # action = max_action * tanh(output)  (fused; tanh goes to the EUP slot)
    out_ref[...] = (max_action * jnp.tanh(x)).astype(out_ref.dtype)


def init_actor_params(key, input_dim, output_dim, hidden_dims):
    """PyTorch-Linear-style uniform init, stored lane-dense and MXU-friendly.

    Returns a flat list [W0, b0, W1, b1, ...] with:
      * W stored as (in, out) (transposed vs. nn.Linear's (out, in)), zero-padded
        so every layer's out-dim (and the next layer's in-dim) is a multiple of
        128, cast to bfloat16 (halves weight DMA bytes, native MXU dtype).
      * b stored as (1, out_pad) float32, zero in the padded columns.
    Zero padding keeps the real columns' numerics exactly unchanged
    (0-weights/0-bias -> 0 activations, LeakyReLU(0)=0).
    """
    dims = [input_dim] + list(hidden_dims) + [output_dim]
    padded = [input_dim] + [_round_up(d, LANE) for d in dims[1:]]
    params = []
    for i in range(len(dims) - 1):
        fan_in, fan_out = dims[i], dims[i + 1]
        pin, pout = padded[i], padded[i + 1]
        key, kw, kb = jax.random.split(key, 3)
        bound = 1.0 / float(fan_in) ** 0.5
        w = jax.random.uniform(kw, (fan_in, fan_out), jnp.float32, -bound, bound)
        b = jax.random.uniform(kb, (1, fan_out), jnp.float32, -bound, bound)
        w_pad = jnp.zeros((pin, pout), jnp.float32).at[:fan_in, :fan_out].set(w)
        b_pad = jnp.zeros((1, pout), jnp.float32).at[:, :fan_out].set(b)
        params.extend([w_pad.astype(jnp.bfloat16), b_pad])
    return params


@functools.partial(jax.jit, static_argnames=("max_action", "output_dim"))
def actor_net_forward(obs, params, *, max_action, output_dim):
    """ActorNet.forward(obs): MLP -> max_action * tanh(.)."""
    if obs.ndim == 1:
        # PyTorch module: 1-D net output is unsqueezed to (1, out_dim).
        obs = obs[None, :]
    obs = obs.astype(jnp.float32)

    batch, input_dim = obs.shape
    n_layers = len(params) // 2
    out_pad = params[-1].shape[-1]

    # Adaptive batch tile; pad batch to a multiple of it (padded rows sliced off).
    tb = _select_batch_tile(batch)
    b_pad = _round_up(batch, tb)
    if b_pad != batch:
        obs = jnp.pad(obs, ((0, b_pad - batch), (0, 0)))
    grid = (b_pad // tb,)

    kernel = functools.partial(
        _actor_mlp_kernel, n_layers=n_layers, max_action=float(max_action)
    )

    # obs / out: tiled along batch (double-buffered stream).
    # weights / biases: constant index_map -> fetched once, VMEM-resident.
    # NOTE: at production widths on v7x (32 MiB default scoped VMEM), the
    # constant weight blocks could additionally be single-buffered via
    # pipeline_mode=pl.Buffered(1); here we size vmem_limit_bytes instead.
    in_specs = [pl.BlockSpec((tb, input_dim), lambda i: (i, 0))]
    for p in params:
        in_specs.append(pl.BlockSpec(p.shape, lambda i: (0, 0)))
    out_spec = pl.BlockSpec((tb, out_pad), lambda i: (i, 0))

    # VMEM budget: double-buffered weights/biases + obs/out streams, with slack.
    vmem_bytes = 2 * tb * input_dim * 4 + 2 * tb * out_pad * 4
    for p in params:
        vmem_bytes += 2 * p.size * p.dtype.itemsize
    vmem_limit = int(min(64 * 2**20, max(16 * 2**20, 2 * vmem_bytes)))

    # Advisory cost estimate for the XLA scheduler.
    flops = 0
    bytes_accessed = obs.size * 4 + b_pad * out_pad * 4
    for layer in range(n_layers):
        w = params[2 * layer]
        b = params[2 * layer + 1]
        flops += 2 * b_pad * w.shape[0] * w.shape[1]
        bytes_accessed += w.size * w.dtype.itemsize + b.size * b.dtype.itemsize
    cost = pl.CostEstimate(
        flops=flops,
        transcendentals=b_pad * out_pad,  # tanh
        bytes_accessed=bytes_accessed,
    )

    action_padded = pl.pallas_call(
        kernel,
        out_shape=jax.ShapeDtypeStruct((b_pad, out_pad), jnp.float32),
        grid=grid,
        in_specs=in_specs,
        out_specs=out_spec,
        compiler_params=pltpu.CompilerParams(
            dimension_semantics=("parallel",),  # megacore batch sharding on v7x
            vmem_limit_bytes=vmem_limit,
        ),
        cost_estimate=cost,
    )(obs, *params)

    # Slice away batch padding and lane padding of the output dim.
    return action_padded[:batch, :output_dim]


def _reference_forward(obs, params, max_action, output_dim):
    """Pure-JAX reference with the same bf16-matmul / f32-accumulate recipe."""
    if obs.ndim == 1:
        obs = obs[None, :]
    x = obs.astype(jnp.float32)
    n_layers = len(params) // 2
    for layer in range(n_layers):
        w = params[2 * layer]                     # bf16
        b = params[2 * layer + 1]                 # f32
        x = jnp.dot(x.astype(jnp.bfloat16), w,
                    preferred_element_type=jnp.float32) + b
        if layer < n_layers - 1:
            x = jnp.maximum(x, LEAKY_SLOPE * x)
    return (max_action * jnp.tanh(x))[:, :output_dim]


if __name__ == "__main__":
    # Small shapes consistent with the module:
    #   batch=2, input_dim=16 (obs dim), hidden_dims=[32, 32], output_dim=4
    batch = 2
    input_dim = 16
    hidden_dims = [32, 32]
    output_dim = 4
    max_action = 2.0

    key = jax.random.PRNGKey(0)
    key, k_obs = jax.random.split(key)
    obs = jax.random.normal(k_obs, (batch, input_dim), dtype=jnp.float32)

    params = init_actor_params(key, input_dim, output_dim, hidden_dims)

    action = actor_net_forward(
        obs, params, max_action=max_action, output_dim=output_dim
    )
    action = jax.block_until_ready(action)

    # Sanity check vs. pure-JAX reference (same bf16-weight recipe).
    ref = _reference_forward(obs, params, max_action, output_dim)
    assert action.shape == (batch, output_dim), action.shape
    assert jnp.allclose(action, ref, atol=1e-3, rtol=1e-3), "mismatch vs reference"

    # 1-D obs behaves like the PyTorch module: output is (1, output_dim).
    action_1d = jax.block_until_ready(
        actor_net_forward(obs[0], params, max_action=max_action, output_dim=output_dim)
    )
    assert action_1d.shape == (1, output_dim), action_1d.shape
    assert jnp.allclose(action_1d, ref[:1], atol=1e-3, rtol=1e-3)

    # Larger batch exercises the multi-tile (grid >= 2) path + padding slice-off.
    key, k_big = jax.random.split(key)
    obs_big = jax.random.normal(k_big, (300, input_dim), dtype=jnp.float32)
    action_big = jax.block_until_ready(
        actor_net_forward(obs_big, params, max_action=max_action, output_dim=output_dim)
    )
    ref_big = _reference_forward(obs_big, params, max_action, output_dim)
    assert action_big.shape == (300, output_dim), action_big.shape
    assert jnp.allclose(action_big, ref_big, atol=1e-3, rtol=1e-3)

    print("KERNEL_OK")
</pallas_src>

<mosaic_0001>
module attributes {stable_mosaic.version = 11 : i64} {
  func.func @_actor_mlp_kernel(%arg0: i32, %arg1: memref<8x16xf32, #tpu.memory_space<vmem>>, %arg2: memref<16x128xbf16, #tpu.memory_space<vmem>>, %arg3: memref<1x128xf32, #tpu.memory_space<vmem>>, %arg4: memref<128x128xbf16, #tpu.memory_space<vmem>>, %arg5: memref<1x128xf32, #tpu.memory_space<vmem>>, %arg6: memref<128x128xbf16, #tpu.memory_space<vmem>>, %arg7: memref<1x128xf32, #tpu.memory_space<vmem>>, %arg8: memref<8x128xf32, #tpu.memory_space<vmem>>) attributes {dimension_semantics = [#tpu.dimension_semantics<parallel>], iteration_bounds = array<i64: 1>, scalar_prefetch = 0 : i64, scratch_operands = 0 : i64, tpu.core_type = #tpu.core_type<tc>, window_params = [{transform_indices = @transform_0, window_bounds = array<i64: 8, 16>}, {pipeline_mode = #tpu.pipeline_mode<synchronous>, transform_indices = @transform_1, window_bounds = array<i64: 16, 128>}, {pipeline_mode = #tpu.pipeline_mode<synchronous>, transform_indices = @transform_2, window_bounds = array<i64: 1, 128>}, {pipeline_mode = #tpu.pipeline_mode<synchronous>, transform_indices = @transform_3, window_bounds = array<i64: 128, 128>}, {pipeline_mode = #tpu.pipeline_mode<synchronous>, transform_indices = @transform_4, window_bounds = array<i64: 1, 128>}, {pipeline_mode = #tpu.pipeline_mode<synchronous>, transform_indices = @transform_5, window_bounds = array<i64: 128, 128>}, {pipeline_mode = #tpu.pipeline_mode<synchronous>, transform_indices = @transform_6, window_bounds = array<i64: 1, 128>}, {transform_indices = @transform_7, window_bounds = array<i64: 8, 128>}]} {
    %c0 = arith.constant 0 : index
    %c0_0 = arith.constant 0 : index
    %0 = vector.load %arg1[%c0, %c0_0] : memref<8x16xf32, #tpu.memory_space<vmem>>, vector<8x16xf32>
    %c0_1 = arith.constant 0 : index
    %c0_2 = arith.constant 0 : index
    %1 = vector.load %arg2[%c0_1, %c0_2] : memref<16x128xbf16, #tpu.memory_space<vmem>>, vector<16x128xbf16>
    %c0_3 = arith.constant 0 : index
    %c0_4 = arith.constant 0 : index
    %2 = vector.load %arg3[%c0_3, %c0_4] : memref<1x128xf32, #tpu.memory_space<vmem>>, vector<1x128xf32>
    %3 = arith.truncf %0 : vector<8x16xf32> to vector<8x16xbf16>
    %cst = arith.constant dense<0.000000e+00> : vector<8x128xf32>
    %4 = tpu.matmul %3, %1, %cst {dimension_numbers = #tpu.dot_dimension_numbers<[1], [0], [0], [1], [0, 0, 1, 1], [], []>} : vector<8x16xbf16>, vector<16x128xbf16>, vector<8x128xf32> -> vector<8x128xf32>
    %5 = vector.broadcast %2 : vector<1x128xf32> to vector<8x128xf32>
    %6 = arith.addf %4, %5 : vector<8x128xf32>
    %cst_5 = arith.constant 0.00999999977 : f32
    %7 = vector.broadcast %cst_5 : f32 to vector<8x128xf32>
    %8 = arith.mulf %7, %6 : vector<8x128xf32>
    %9 = arith.maximumf %6, %8 : vector<8x128xf32>
    %c0_6 = arith.constant 0 : index
    %c0_7 = arith.constant 0 : index
    %10 = vector.load %arg4[%c0_6, %c0_7] : memref<128x128xbf16, #tpu.memory_space<vmem>>, vector<128x128xbf16>
    %c0_8 = arith.constant 0 : index
    %c0_9 = arith.constant 0 : index
    %11 = vector.load %arg5[%c0_8, %c0_9] : memref<1x128xf32, #tpu.memory_space<vmem>>, vector<1x128xf32>
    %12 = arith.truncf %9 : vector<8x128xf32> to vector<8x128xbf16>
    %cst_10 = arith.constant dense<0.000000e+00> : vector<8x128xf32>
    %13 = tpu.matmul %12, %10, %cst_10 {dimension_numbers = #tpu.dot_dimension_numbers<[1], [0], [0], [1], [0, 0, 1, 1], [], []>} : vector<8x128xbf16>, vector<128x128xbf16>, vector<8x128xf32> -> vector<8x128xf32>
    %14 = vector.broadcast %11 : vector<1x128xf32> to vector<8x128xf32>
    %15 = arith.addf %13, %14 : vector<8x128xf32>
    %cst_11 = arith.constant 0.00999999977 : f32
    %16 = vector.broadcast %cst_11 : f32 to vector<8x128xf32>
    %17 = arith.mulf %16, %15 : vector<8x128xf32>
    %18 = arith.maximumf %15, %17 : vector<8x128xf32>
    %c0_12 = arith.constant 0 : index
    %c0_13 = arith.constant 0 : index
    %19 = vector.load %arg6[%c0_12, %c0_13] : memref<128x128xbf16, #tpu.memory_space<vmem>>, vector<128x128xbf16>
    %c0_14 = arith.constant 0 : index
    %c0_15 = arith.constant 0 : index
    %20 = vector.load %arg7[%c0_14, %c0_15] : memref<1x128xf32, #tpu.memory_space<vmem>>, vector<1x128xf32>
    %21 = arith.truncf %18 : vector<8x128xf32> to vector<8x128xbf16>
    %cst_16 = arith.constant dense<0.000000e+00> : vector<8x128xf32>
    %22 = tpu.matmul %21, %19, %cst_16 {dimension_numbers = #tpu.dot_dimension_numbers<[1], [0], [0], [1], [0, 0, 1, 1], [], []>} : vector<8x128xbf16>, vector<128x128xbf16>, vector<8x128xf32> -> vector<8x128xf32>
    %23 = vector.broadcast %20 : vector<1x128xf32> to vector<8x128xf32>
    %24 = arith.addf %22, %23 : vector<8x128xf32>
    %25 = math.tanh %24 : vector<8x128xf32>
    %cst_17 = arith.constant 2.000000e+00 : f32
    %26 = vector.broadcast %cst_17 : f32 to vector<8x128xf32>
    %27 = arith.mulf %26, %25 : vector<8x128xf32>
    %c0_18 = arith.constant 0 : index
    %c0_19 = arith.constant 0 : index
    %28 = vector.load %arg8[%c0_18, %c0_19] : memref<8x128xf32, #tpu.memory_space<vmem>>, vector<8x128xf32>
    tpu.vector_store %arg8[%c0_18, %c0_19], %27 {strides = array<i32>} : memref<8x128xf32, #tpu.memory_space<vmem>>, vector<8x128xf32>,
    return
  }
  func.func @transform_0(%arg0: i32) -> (i32, i32) {
    %c0_i32 = arith.constant 0 : i32
    %c0_i32_0 = arith.constant 0 : i32
    return %arg0, %c0_i32 : i32, i32
  }
  func.func @transform_1(%arg0: i32) -> (i32, i32) {
    %c0_i32 = arith.constant 0 : i32
    %c0_i32_0 = arith.constant 0 : i32
    %c0_i32_1 = arith.constant 0 : i32
    return %c0_i32, %c0_i32_0 : i32, i32
  }
  func.func @transform_2(%arg0: i32) -> (i32, i32) {
    %c0_i32 = arith.constant 0 : i32
    %c0_i32_0 = arith.constant 0 : i32
    %c0_i32_1 = arith.constant 0 : i32
    return %c0_i32, %c0_i32_0 : i32, i32
  }
  func.func @transform_3(%arg0: i32) -> (i32, i32) {
    %c0_i32 = arith.constant 0 : i32
    %c0_i32_0 = arith.constant 0 : i32
    %c0_i32_1 = arith.constant 0 : i32
    return %c0_i32, %c0_i32_0 : i32, i32
  }
  func.func @transform_4(%arg0: i32) -> (i32, i32) {
    %c0_i32 = arith.constant 0 : i32
    %c0_i32_0 = arith.constant 0 : i32
    %c0_i32_1 = arith.constant 0 : i32
    return %c0_i32, %c0_i32_0 : i32, i32
  }
  func.func @transform_5(%arg0: i32) -> (i32, i32) {
    %c0_i32 = arith.constant 0 : i32
    %c0_i32_0 = arith.constant 0 : i32
    %c0_i32_1 = arith.constant 0 : i32
    return %c0_i32, %c0_i32_0 : i32, i32
  }
  func.func @transform_6(%arg0: i32) -> (i32, i32) {
    %c0_i32 = arith.constant 0 : i32
    %c0_i32_0 = arith.constant 0 : i32
    %c0_i32_1 = arith.constant 0 : i32
    return %c0_i32, %c0_i32_0 : i32, i32
  }
  func.func @transform_7(%arg0: i32) -> (i32, i32) {
    %c0_i32 = arith.constant 0 : i32
    %c0_i32_0 = arith.constant 0 : i32
    return %arg0, %c0_i32 : i32, i32
  }
}

</mosaic_0001>

<bundles_post_ra>
// kernel: actor_net_forward.1
= control target key start
LH: loop header
LB: loop body
LE: loop exit
PB: predicated region body
PF: predicated region fallthrough
CT: control target
= control target key end

     0   :  { %12 = vsyncpa [#allocation3], 0  ;;  %s621_s0 = inlined_call_operand.vmem [shape: f32[8,16], index: 0, kind: input, shape index: {}]   ;;  %s622_s1 = inlined_call_operand.vmem [shape: bf16[16,128], index: 1, kind: input, shape index: {}]   ;;  %s623_s2 = inlined_call_operand.vmem [shape: f32[1,128], index: 2, kind: input, shape index: {}]   ;;  %s624_s3 = inlined_call_operand.hbm [shape: bf16[128,128], index: 3, kind: input, shape index: {}]   ;;  %s625_s4 = inlined_call_operand.vmem [shape: f32[1,128], index: 4, kind: input, shape index: {}]   ;;  %s626_s5 = inlined_call_operand.hbm [shape: bf16[128,128], index: 5, kind: input, shape index: {}]   ;;  %s627_s6 = inlined_call_operand.vmem [shape: f32[1,128], index: 6, kind: input, shape index: {}]   ;;  %s628_s7 = inlined_call_operand.vmem [shape: f32[8,128], index: 7, kind: output, shape index: {}]  }
   0x1   :  { %13 = vsyncpa [#allocation5], 0  ;;  %s513_s24 = smov [#allocation2]   ;;  %s465_s28 = scalar_lea.hbm %s624_s3, 1024 }
   0x2   :  { %s25_s25 = sshll.u32 %s513_s24, 4  ;;  %p466_p0 = scmp.ne.s32.totalorder %s624_s3, %s465_s28  ;;  %s26_s25 = int_to_ptr.vmem [resolvable:$true] %s25_s25 }
   0x3   :  { %p469_p1 = scmp.lt.u32.totalorder %s465_s28, %s624_s3 }
   0x5   :  { %p471_p2 = pnand %p469_p1, %p466_p0 }
   0x7   :  { %474 = shalt.err (!%p471_p2)
}
   0x8   :  { %s475_s10 = scalar_lea.vmem %s26_s25, 1024  ;;  %p480_p4 = scmp.lt.s32.totalorder %s26_s25, %s26_s25 }
   0x9   :  { %p476_p3 = scmp.ne.s32.totalorder %s26_s25, %s475_s10  ;;  %p481_p5 = scmp.lt.s32.totalorder %s475_s10, %s475_s10 }
   0xb   :  { %p482_p6 = por %p481_p5, %p480_p4 }
   0xd   :  { %p483_p7 = pnand %p482_p6, %p476_p3 }
   0xf   :  { %486 = shalt.err (!%p483_p7)
}
  0x10   :  { %s514_s11 = smov 64   ;;  %s515_s12 = smov 4  }
  0x11   :  { %31 = dma.hbm_to_vmem [thread:$0]  %s624_s3, 1024, %s26_s25, [#allocation3], %s514_s11, %s514_s11, %s515_s12  }
  0x12   :  { %s516_s15 = smov [#allocation4]   ;;  %s487_s19 = scalar_lea.hbm %s626_s5, 1024 }
  0x13   :  { %s39_s16 = sshll.u32 %s516_s15, 4  ;;  %p488_p8 = scmp.ne.s32.totalorder %s626_s5, %s487_s19  ;;  %s40_s16 = int_to_ptr.vmem [resolvable:$true] %s39_s16 }
  0x14   :  { %p491_p9 = scmp.lt.u32.totalorder %s487_s19, %s626_s5 }
  0x16   :  { %p493_p10 = pnand %p491_p9, %p488_p8 }
  0x18   :  { %496 = shalt.err (!%p493_p10)
}
  0x19   :  { %s497_s24 = scalar_lea.vmem %s40_s16, 1024  ;;  %p502_p12 = scmp.lt.s32.totalorder %s40_s16, %s40_s16 }
  0x1a   :  { %p498_p11 = scmp.ne.s32.totalorder %s40_s16, %s497_s24  ;;  %p503_p13 = scmp.lt.s32.totalorder %s497_s24, %s497_s24 }
  0x1c   :  { %p504_p0 = por %p503_p13, %p502_p12 }
  0x1e   :  { %p505_p1 = pnand %p504_p0, %p498_p11 }
  0x20   :  { %508 = shalt.err (!%p505_p1)
}
  0x21   :  { %45 = dma.hbm_to_vmem [thread:$0]  %s626_s5, 1024, %s40_s16, [#allocation5], %s514_s11, %s514_s11, %s515_s12  }
  0x22   :  { %509 = dma.done.wait [#allocation3], 1024  }
  0x23   :  { %510 = vsyncadd [#allocation3], 4294966272 }
  0x24   :  { %511 = dma.done.wait [#allocation5], 1024  }
  0x25   :  { %512 = vsyncadd [#allocation5], 4294966272  ;;  %v517_v0 = vmov 0.0   ;;  %vm518_vm0 = vmmov 0   ;;  %v446_v1 = vld [vmem:[%s622_s1] sm:$0xff]   ;;  %vm72_vm1 = vcmask 130048  }
  0x26   :  { %394 = vmatprep.subr.bf16.mxu0 %v517_v0  ;;  %396 = vmatprep.mubr.msk.bf16.mxu0 %vm518_vm0, %v517_v0  ;;  %v55_v2 = vld [vmem:[%s621_s0] sm:$0xff]  ;;  %v448_v5 = vld [vmem:[#allocation2 + $0x8] sm:$0xff]   ;;  %v449_v6 = vld [vmem:[#allocation2 + $0x10] sm:$0xff]  }
  0x27   :  { %400 = vmatprep.subr.bf16.mxu1 %v517_v0  ;;  %416 = vmatprep.mubr.msk.bf16.mxu1 %vm518_vm0, %v517_v0  ;;  %v59_v3 = vpack.c.bf16 %v55_v2, %v55_v2  ;;  %v447_v4 = vld [vmem:[#allocation2] sm:$0xff]   ;;  %v450_v7 = vld [vmem:[#allocation2 + $0x18] sm:$0xff]   ;;  %v452_v9 = vld [vmem:[#allocation2 + $0x28] sm:$0xff]  }
  0x28   :  { %395 = vmatpush3.bf16.msra.mxu0 %v446_v1  ;;  %401 = vmatpush3.bf16.msra.mxu1 %v447_v4  ;;  %v451_v8 = vld [vmem:[#allocation2 + $0x20] sm:$0xff]   ;;  %v453_v10 = vld [vmem:[#allocation2 + $0x30] sm:$0xff]   ;;  %v454_v11 = vld [vmem:[#allocation2 + $0x38] sm:$0xff]  }
  0x29   :  { %420 = vmatprep.subr.bf16.mxu0 %v517_v0  ;;  %402 = vmatprep.subr.bf16.mxu1 %v517_v0  ;;  %v455_v12 = vld [vmem:[#allocation4] sm:$0xff]   ;;  %v456_v13 = vld [vmem:[#allocation4 + $0x8] sm:$0xff]   ;;  %v457_v14 = vld [vmem:[#allocation4 + $0x10] sm:$0xff]  }
  0x2a   :  { %v458_v15 = vld [vmem:[#allocation4 + $0x18] sm:$0xff]   ;;  %v459_v16 = vld [vmem:[#allocation4 + $0x20] sm:$0xff]   ;;  %v460_v17 = vld [vmem:[#allocation4 + $0x28] sm:$0xff]  }
  0x2b   :  { %397 = vmatmul.mubr.msk.bf16.vlgmr.msra.gmra.mrb[0].mxu0 %vm72_vm1, %v59_v3  ;;  %v353_v18 = vld [vmem:[%s623_s2] ss:$0 sm:$0xff]  ;;  %v461_v27 = vld [vmem:[#allocation4 + $0x30] sm:$0xff]   ;;  %v462_v28 = vld [vmem:[#allocation4 + $0x38] sm:$0xff]  }
  0x2c   :  { %436 = vmatprep.mubr.msk.bf16.mxu0 %vm518_vm0, %v517_v0  ;;  %403 = vmatpush3.bf16.msra.mxu1 %v448_v5  ;;  %v356_v29 = vld [vmem:[%s625_s4] ss:$0 sm:$0xff] }
  0x2d   :  { %404 = vmatprep.subr.bf16.mxu1 %v517_v0  ;;  %421 = vmatpush3.bf16.msra.mxu0 %v455_v12  ;;  %v365_v38 = vld [vmem:[%s627_s6] ss:$0 sm:$0xff] }
  0x2e   :  { %422 = vmatprep.subr.bf16.mxu0 %v517_v0 }
  0x30   :  { %405 = vmatpush3.bf16.msra.mxu1 %v449_v6 }
  0x31   :  { %406 = vmatprep.subr.bf16.mxu1 %v517_v0  ;;  %423 = vmatpush3.bf16.msra.mxu0 %v456_v13 }
  0x32   :  { %424 = vmatprep.subr.bf16.mxu0 %v517_v0 }
  0x34   :  { %407 = vmatpush3.bf16.msra.mxu1 %v450_v7 }
  0x35   :  { %408 = vmatprep.subr.bf16.mxu1 %v517_v0  ;;  %425 = vmatpush3.bf16.msra.mxu0 %v457_v14 }
  0x36   :  { %426 = vmatprep.subr.bf16.mxu0 %v517_v0 }
  0x38   :  { %409 = vmatpush3.bf16.msra.mxu1 %v451_v8 }
  0x39   :  { %410 = vmatprep.subr.bf16.mxu1 %v517_v0  ;;  %427 = vmatpush3.bf16.msra.mxu0 %v458_v15 }
  0x3a   :  { %428 = vmatprep.subr.bf16.mxu0 %v517_v0 }
  0x3c   :  { %411 = vmatpush3.bf16.msra.mxu1 %v452_v9 }
  0x3d   :  { %412 = vmatprep.subr.bf16.mxu1 %v517_v0  ;;  %429 = vmatpush3.bf16.msra.mxu0 %v459_v16 }
  0x3e   :  { %430 = vmatprep.subr.bf16.mxu0 %v517_v0 }
  0x40   :  { %413 = vmatpush3.bf16.msra.mxu1 %v453_v10 }
  0x41   :  { %414 = vmatprep.subr.bf16.mxu1 %v517_v0  ;;  %431 = vmatpush3.bf16.msra.mxu0 %v460_v17 }
  0x42   :  { %432 = vmatprep.subr.bf16.mxu0 %v517_v0 }
  0x44   :  { %415 = vmatpush3.bf16.msra.mxu1 %v454_v11 }
  0x45   :  { %433 = vmatpush3.bf16.msra.mxu0 %v461_v27 }
  0x46   :  { %434 = vmatprep.subr.bf16.mxu0 %v517_v0 }
  0x49   :  { %435 = vmatpush3.bf16.msra.mxu0 %v462_v28 }
  0xfe   :  { %v110_v19 = vpop.f32.mrb[0].mxu0 }
  0xff   :  { %v111_v20 = vadd.f32 %v353_v18, %v110_v19  ;;  %v398_v21 = vpop.f32.mrb[1].mxu0 }
 0x100   :  { %v113_v22 = vpop.f32.mrb[2].mxu0 }
 0x101   :  { %v116_v23 = vmul.f32 0.01, %v111_v20  ;;  %v399_v24 = vpop.f32.mrb[3].mxu0 }
 0x103   :  { %v117_v25 = vmax.f32 %v111_v20, %v116_v23 }
 0x105   :  { %v135_v26 = vpack.c.bf16 %v117_v25, %v117_v25 }
 0x107   :  { %417 = vmatmul.mubr.bf16.vlgmr.msra.gmra.mrb[0].mxu1 %v135_v26 }
 0x1da   :  { %v224_v30 = vpop.f32.mrb[0].mxu1 }
 0x1db   :  { %v225_v31 = vadd.f32 %v356_v29, %v224_v30  ;;  %v418_v32 = vpop.f32.mrb[1].mxu1 }
 0x1dc   :  { %v227_v33 = vpop.f32.mrb[2].mxu1 }
 0x1dd   :  { %v230_v34 = vmul.f32 0.01, %v225_v31  ;;  %v419_v35 = vpop.f32.mrb[3].mxu1 }
 0x1df   :  { %v231_v36 = vmax.f32 %v225_v31, %v230_v34 }
 0x1e1   :  { %v249_v37 = vpack.c.bf16 %v231_v36, %v231_v36 }
 0x1e3   :  { %437 = vmatmul.mubr.bf16.vlgmr.msra.gmra.mrb[4].mxu0 %v249_v37 }
 0x2b6   :  { %v338_v39 = vpop.f32.mrb[4].mxu0 }
 0x2b7   :  { %v339_v40 = vadd.f32 %v365_v38, %v338_v39  ;;  %v438_v41 = vpop.f32.mrb[5].mxu0 }
 0x2b8   :  { %v341_v42 = vpop.f32.mrb[6].mxu0 }
 0x2b9   :  { %463 = vtanh.f32 %v339_v40  ;;  %v439_v43 = vpop.f32.mrb[7].mxu0 }
 0x2c3   :  { %v464_v44 = vpop.eup %463 }
 0x2c4   :  { %v345_v45 = vmul.f32 2.0, %v464_v44 }
 0x2c6   :  { %346 = vst [vmem:[%s628_s7] sm:$0xff] %v345_v45 }
 0x2c7   :  { %351 = vsyncpa [#allocation3], 1 }
 0x2c8   :  { %352 = vsyncpa [#allocation5], 1 }

</bundles_post_ra>
